<compile_context>
chip_gen: v7x
topology: tpu7x:2x2x1
jax: 0.10.0
libtpu: 0.0.40
codegen_flags: <defaults>
</compile_context>

<pallas_src>
import math
import functools

import jax
import jax.numpy as jnp
from jax import lax
from jax.experimental import pallas as pl
from jax.experimental.pallas import tpu as pltpu


# ----------------------------------------------------------------------------
# Hardware-aware VMEM budget: ~75% of physical VMEM, capped at 100 MiB.
# (128 MiB parts -> 96 MiB, v7x 64 MiB parts -> 48 MiB.)
# ----------------------------------------------------------------------------
def _vmem_limit_bytes():
    cap = 128 * 1024 * 1024
    try:
        cap = int(getattr(pltpu.get_tpu_info(), "vmem_capacity_bytes", cap))
    except Exception:
        pass
    return min(cap * 3 // 4, 100 * 1024 * 1024)


def _heads_per_group(num_heads, head_dim):
    """Smallest head group whose lane width (g*head_dim) is a 128 multiple,
    falling back to all heads (block == full H) at tiny shapes."""
    for g in range(1, num_heads + 1):
        if num_heads % g == 0 and (g * head_dim) % 128 == 0:
            return g
    return num_heads


# ----------------------------------------------------------------------------
# Kernel 1: fused QKV projection.
#   x (block_m, H) bf16  @  w (3, H, H) bf16  + b (3, 1, H) f32
#   -> q, k, v  (block_m, H) bf16, stored lane-dense, f32 accumulation.
# ----------------------------------------------------------------------------
def qkv_proj_kernel(x_ref, w_ref, b_ref, q_ref, k_ref, v_ref):
    x = x_ref[...]                                           # bf16, no per-step cast
    for j, out in enumerate((q_ref, k_ref, v_ref)):          # static, 3 direct dots
        acc = jnp.dot(x, w_ref[j], preferred_element_type=jnp.float32) + b_ref[j]
        out[...] = acc.astype(out.dtype)


# ----------------------------------------------------------------------------
# Kernel 2: multi-head attention for one (batch, head-group) block.
#   q/k/v blocks: (1, S, G*d) bf16 (1/sqrt(d) already folded into Q).
#   mask block:   (1, 1, S) f32 additive (0 / -10000), broadcast over query rows.
#   Context for the whole head group concatenated once and stored lane-dense
#   straight into the (B, S, H) merged-heads layout.
# ----------------------------------------------------------------------------
def attention_kernel(q_ref, k_ref, v_ref, mask_ref, o_ref, *, heads_in_block, head_dim):
    mask = mask_ref[0]                                       # (1, S) f32
    ctxs = []
    for h in range(heads_in_block):                          # small static loop (G=2 typical)
        sl = slice(h * head_dim, (h + 1) * head_dim)
        qh = q_ref[0, :, sl]                                 # (S, d) bf16
        kh = k_ref[0, :, sl]
        vh = v_ref[0, :, sl]

        # Q K^T contracting last dims (no explicit transpose), f32 accumulation.
        scores = lax.dot_general(qh, kh, (((1,), (1,)), ((), ())),
                                 preferred_element_type=jnp.float32)   # (S, S)
        scores = scores + mask

        m = jnp.max(scores, axis=-1, keepdims=True)
        p = jnp.exp(scores - m)
        l = jnp.sum(p, axis=-1, keepdims=True)
        # TODO(synk): nn.Dropout(attention_probs_dropout_prob) omitted — identity in
        # eval/inference mode; training needs a pltpu.prng_seed/prng_random_bits mask.

        ctx = jnp.dot(p.astype(jnp.bfloat16), vh,
                      preferred_element_type=jnp.float32)    # (S, d)
        # Normalize after the PV matmul: S*d multiplies instead of S*S.
        ctxs.append(ctx * pl.reciprocal(l, approx=False))

    ctx_all = ctxs[0] if heads_in_block == 1 else jnp.concatenate(ctxs, axis=-1)
    o_ref[0] = ctx_all.astype(o_ref.dtype)                   # single lane-dense store


# ----------------------------------------------------------------------------
# Parameter prep (ONCE, outside the hot path).
# nn.Linear weights are (out, in); pre-transpose to (in, out), stack to (3,H,H),
# fold 1/sqrt(head_dim) into the query weight/bias, pre-cast weights to bf16.
# ----------------------------------------------------------------------------
def prepare_params(wq, bq, wk, bk, wv, bv, *, num_heads):
    H = wq.shape[0]
    scale = 1.0 / math.sqrt(H // num_heads)
    w_qkv = jnp.stack([wq.T * scale, wk.T, wv.T], axis=0).astype(jnp.bfloat16)  # (3,H,H)
    b_qkv = jnp.stack([bq * scale, bk, bv], axis=0).reshape(3, 1, H)            # (3,1,H) f32
    return w_qkv, b_qkv.astype(jnp.float32)


# ----------------------------------------------------------------------------
# Wrapper: BertSelfAttention.forward
# ----------------------------------------------------------------------------
def bert_self_attention(hidden_states, attention_mask, w_qkv, b_qkv,
                        *, num_heads, block_m=None):
    """hidden_states: (B, S, H); attention_mask: additive, (B,1,1,S)/(B,1,S)/(B,S).
       Returns context_layer (B, S, H) in hidden_states.dtype."""
    B, S, H = hidden_states.shape
    assert H % num_heads == 0
    head_dim = H // num_heads
    M = B * S

    if block_m is None:
        block_m = M if M <= 1024 else next(
            (bm for bm in (1024, 512, 256, 128) if M % bm == 0), M)
    assert M % block_m == 0, "M must be divisible by block_m"

    g = _heads_per_group(num_heads, head_dim)        # heads per attention block
    num_groups = num_heads // g
    gd = g * head_dim                                # lane width per block

    vmem_limit = _vmem_limit_bytes()
    mask = attention_mask.reshape(B, 1, S).astype(jnp.float32)
    x_bf16 = hidden_states.reshape(M, H).astype(jnp.bfloat16)

    # --- fused QKV projection, tiled over M ('parallel') -------------------------
    proj_cost = pl.CostEstimate(
        flops=2 * M * H * 3 * H,
        transcendentals=0,
        bytes_accessed=M * H * 2 + 3 * H * H * 2 + 3 * H * 4 + 3 * M * H * 2)
    qkv_proj = pl.pallas_call(
        qkv_proj_kernel,
        out_shape=[jax.ShapeDtypeStruct((M, H), jnp.bfloat16) for _ in range(3)],
        grid_spec=pltpu.PrefetchScalarGridSpec(
            num_scalar_prefetch=0,
            grid=(M // block_m,),
            in_specs=[
                pl.BlockSpec((block_m, H), lambda i: (i, 0)),   # x tile (bf16)
                pl.BlockSpec((3, H, H), lambda i: (0, 0, 0)),   # stacked bf16 weights
                pl.BlockSpec((3, 1, H), lambda i: (0, 0, 0)),   # biases (f32)
            ],
            out_specs=[pl.BlockSpec((block_m, H), lambda i: (i, 0)) for _ in range(3)],
        ),
        compiler_params=pltpu.CompilerParams(
            dimension_semantics=("parallel",),
            vmem_limit_bytes=vmem_limit,
        ),
        cost_estimate=proj_cost,
    )
    q2d, k2d, v2d = qkv_proj(x_bf16, w_qkv, b_qkv)
    q = q2d.reshape(B, S, H)
    k = k2d.reshape(B, S, H)
    v = v2d.reshape(B, S, H)

    # --- multi-head attention, grid over (batch, head_group), both 'parallel' ----
    out_itemsize = jnp.dtype(hidden_states.dtype).itemsize
    attn_cost = pl.CostEstimate(
        flops=4 * B * num_heads * S * S * head_dim,
        transcendentals=B * num_heads * S * S,
        bytes_accessed=3 * B * S * H * 2 + B * S * 4 + B * S * H * out_itemsize)
    qkv_spec = pl.BlockSpec((1, S, gd), lambda b, h: (b, 0, h))
    attn = pl.pallas_call(
        functools.partial(attention_kernel, heads_in_block=g, head_dim=head_dim),
        out_shape=jax.ShapeDtypeStruct((B, S, H), hidden_states.dtype),
        grid_spec=pltpu.PrefetchScalarGridSpec(
            num_scalar_prefetch=0,
            grid=(B, num_groups),
            in_specs=[
                qkv_spec,                                           # q
                qkv_spec,                                           # k
                qkv_spec,                                           # v
                pl.BlockSpec((1, 1, S), lambda b, h: (b, 0, 0)),    # mask
            ],
            out_specs=pl.BlockSpec((1, S, gd), lambda b, h: (b, 0, h)),
        ),
        compiler_params=pltpu.CompilerParams(
            dimension_semantics=("parallel", "parallel"),
            vmem_limit_bytes=vmem_limit,
        ),
        cost_estimate=attn_cost,
    )
    return attn(q, k, v, mask)


# ----------------------------------------------------------------------------
# Pure-JAX f32 reference (mirrors the PyTorch forward, dropout = identity).
# ----------------------------------------------------------------------------
def reference(hidden_states, attention_mask, params, num_heads):
    B, S, H = hidden_states.shape
    d = H // num_heads

    def lin(x, w, b):
        return x @ w.T + b

    def split_heads(x):
        return x.reshape(B, S, num_heads, d).transpose(0, 2, 1, 3)

    q = split_heads(lin(hidden_states, params["wq"], params["bq"]))
    k = split_heads(lin(hidden_states, params["wk"], params["bk"]))
    v = split_heads(lin(hidden_states, params["wv"], params["bv"]))

    scores = jnp.einsum('bhqd,bhkd->bhqk', q, k) / math.sqrt(d)
    scores = scores + attention_mask.reshape(B, 1, 1, S)
    probs = jax.nn.softmax(scores, axis=-1)
    ctx = jnp.einsum('bhqk,bhkd->bhqd', probs, v)
    return ctx.transpose(0, 2, 1, 3).reshape(B, S, H)


if __name__ == "__main__":
    # Small deterministic config: batch=2, seq=8, hidden=32, heads=4 (head_dim=8).
    B, S, H, NH = 2, 8, 32, 4
    key = jax.random.PRNGKey(0)
    ks = jax.random.split(key, 8)

    params = {
        "wq": 0.05 * jax.random.normal(ks[0], (H, H), jnp.float32),   # (out, in)
        "bq": 0.05 * jax.random.normal(ks[1], (H,), jnp.float32),
        "wk": 0.05 * jax.random.normal(ks[2], (H, H), jnp.float32),
        "bk": 0.05 * jax.random.normal(ks[3], (H,), jnp.float32),
        "wv": 0.05 * jax.random.normal(ks[4], (H, H), jnp.float32),
        "bv": 0.05 * jax.random.normal(ks[5], (H,), jnp.float32),
    }
    x = jax.random.normal(ks[6], (B, S, H), jnp.float32)

    # Standard BERT extended additive mask (B, 1, 1, S): 0 = visible, -10000 = masked.
    visible = jnp.ones((B, S), jnp.float32).at[1, 6:].set(0.0)
    attention_mask = ((1.0 - visible) * -10000.0).reshape(B, 1, 1, S)

    # Pre-transpose / stack / scale / bf16-cast weights once (outside the hot path).
    w_qkv, b_qkv = prepare_params(params["wq"], params["bq"],
                                  params["wk"], params["bk"],
                                  params["wv"], params["bv"],
                                  num_heads=NH)

    out = bert_self_attention(x, attention_mask, w_qkv, b_qkv, num_heads=NH)
    out = jax.block_until_ready(out)

    ref = reference(x, attention_mask, params, NH)
    assert out.shape == (B, S, H)
    # bf16 weights + bf16 QKV intermediates -> compare with bf16-level tolerance.
    max_err = float(jnp.max(jnp.abs(out - ref)))
    assert jnp.allclose(out, ref, atol=2e-2, rtol=2e-2), f"mismatch vs reference: {max_err}"

    print("KERNEL_OK")
</pallas_src>

<mosaic_0001>
module attributes {stable_mosaic.version = 11 : i64} {
  func.func @qkv_proj_kernel(%arg0: i32, %arg1: memref<16x32xbf16, #tpu.memory_space<vmem>>, %arg2: memref<3x32x32xbf16, #tpu.memory_space<vmem>>, %arg3: memref<3x1x32xf32, #tpu.memory_space<vmem>>, %arg4: memref<16x32xbf16, #tpu.memory_space<vmem>>, %arg5: memref<16x32xbf16, #tpu.memory_space<vmem>>, %arg6: memref<16x32xbf16, #tpu.memory_space<vmem>>) attributes {dimension_semantics = [#tpu.dimension_semantics<parallel>], iteration_bounds = array<i64: 1>, scalar_prefetch = 0 : i64, scratch_operands = 0 : i64, tpu.core_type = #tpu.core_type<tc>, window_params = [{transform_indices = @transform_0, window_bounds = array<i64: 16, 32>}, {pipeline_mode = #tpu.pipeline_mode<synchronous>, transform_indices = @transform_1, window_bounds = array<i64: 3, 32, 32>}, {pipeline_mode = #tpu.pipeline_mode<synchronous>, transform_indices = @transform_2, window_bounds = array<i64: 3, 1, 32>}, {transform_indices = @transform_3, window_bounds = array<i64: 16, 32>}, {transform_indices = @transform_4, window_bounds = array<i64: 16, 32>}, {transform_indices = @transform_5, window_bounds = array<i64: 16, 32>}]} {
    %c0 = arith.constant 0 : index
    %c0_0 = arith.constant 0 : index
    %0 = vector.load %arg1[%c0, %c0_0] : memref<16x32xbf16, #tpu.memory_space<vmem>>, vector<16x32xbf16>
    %c0_1 = arith.constant 0 : index
    %c0_2 = arith.constant 0 : index
    %c0_3 = arith.constant 0 : index
    %1 = vector.load %arg2[%c0_1, %c0_2, %c0_3] : memref<3x32x32xbf16, #tpu.memory_space<vmem>>, vector<1x32x32xbf16>
    %2 = vector.shape_cast %1 : vector<1x32x32xbf16> to vector<32x32xbf16>
    %cst = arith.constant dense<0.000000e+00> : vector<16x32xf32>
    %3 = tpu.matmul %0, %2, %cst {dimension_numbers = #tpu.dot_dimension_numbers<[1], [0], [0], [1], [0, 0, 1, 1], [], []>} : vector<16x32xbf16>, vector<32x32xbf16>, vector<16x32xf32> -> vector<16x32xf32>
    %c0_4 = arith.constant 0 : index
    %c0_5 = arith.constant 0 : index
    %c0_6 = arith.constant 0 : index
    %4 = vector.load %arg3[%c0_4, %c0_5, %c0_6] : memref<3x1x32xf32, #tpu.memory_space<vmem>>, vector<1x1x32xf32>
    %5 = vector.shape_cast %4 : vector<1x1x32xf32> to vector<1x32xf32>
    %6 = vector.broadcast %5 : vector<1x32xf32> to vector<16x32xf32>
    %7 = arith.addf %3, %6 : vector<16x32xf32>
    %8 = arith.truncf %7 : vector<16x32xf32> to vector<16x32xbf16>
    %c0_7 = arith.constant 0 : index
    %c0_8 = arith.constant 0 : index
    %9 = vector.load %arg4[%c0_7, %c0_8] : memref<16x32xbf16, #tpu.memory_space<vmem>>, vector<16x32xbf16>
    tpu.vector_store %arg4[%c0_7, %c0_8], %8 {strides = array<i32>} : memref<16x32xbf16, #tpu.memory_space<vmem>>, vector<16x32xbf16>,
    %c1 = arith.constant 1 : index
    %c0_9 = arith.constant 0 : index
    %c0_10 = arith.constant 0 : index
    %10 = vector.load %arg2[%c1, %c0_9, %c0_10] : memref<3x32x32xbf16, #tpu.memory_space<vmem>>, vector<1x32x32xbf16>
    %11 = vector.shape_cast %10 : vector<1x32x32xbf16> to vector<32x32xbf16>
    %cst_11 = arith.constant dense<0.000000e+00> : vector<16x32xf32>
    %12 = tpu.matmul %0, %11, %cst_11 {dimension_numbers = #tpu.dot_dimension_numbers<[1], [0], [0], [1], [0, 0, 1, 1], [], []>} : vector<16x32xbf16>, vector<32x32xbf16>, vector<16x32xf32> -> vector<16x32xf32>
    %c1_12 = arith.constant 1 : index
    %c0_13 = arith.constant 0 : index
    %c0_14 = arith.constant 0 : index
    %13 = vector.load %arg3[%c1_12, %c0_13, %c0_14] : memref<3x1x32xf32, #tpu.memory_space<vmem>>, vector<1x1x32xf32>
    %14 = vector.shape_cast %13 : vector<1x1x32xf32> to vector<1x32xf32>
    %15 = vector.broadcast %14 : vector<1x32xf32> to vector<16x32xf32>
    %16 = arith.addf %12, %15 : vector<16x32xf32>
    %17 = arith.truncf %16 : vector<16x32xf32> to vector<16x32xbf16>
    %c0_15 = arith.constant 0 : index
    %c0_16 = arith.constant 0 : index
    %18 = vector.load %arg5[%c0_15, %c0_16] : memref<16x32xbf16, #tpu.memory_space<vmem>>, vector<16x32xbf16>
    tpu.vector_store %arg5[%c0_15, %c0_16], %17 {strides = array<i32>} : memref<16x32xbf16, #tpu.memory_space<vmem>>, vector<16x32xbf16>,
    %c2 = arith.constant 2 : index
    %c0_17 = arith.constant 0 : index
    %c0_18 = arith.constant 0 : index
    %19 = vector.load %arg2[%c2, %c0_17, %c0_18] : memref<3x32x32xbf16, #tpu.memory_space<vmem>>, vector<1x32x32xbf16>
    %20 = vector.shape_cast %19 : vector<1x32x32xbf16> to vector<32x32xbf16>
    %cst_19 = arith.constant dense<0.000000e+00> : vector<16x32xf32>
    %21 = tpu.matmul %0, %20, %cst_19 {dimension_numbers = #tpu.dot_dimension_numbers<[1], [0], [0], [1], [0, 0, 1, 1], [], []>} : vector<16x32xbf16>, vector<32x32xbf16>, vector<16x32xf32> -> vector<16x32xf32>
    %c2_20 = arith.constant 2 : index
    %c0_21 = arith.constant 0 : index
    %c0_22 = arith.constant 0 : index
    %22 = vector.load %arg3[%c2_20, %c0_21, %c0_22] : memref<3x1x32xf32, #tpu.memory_space<vmem>>, vector<1x1x32xf32>
    %23 = vector.shape_cast %22 : vector<1x1x32xf32> to vector<1x32xf32>
    %24 = vector.broadcast %23 : vector<1x32xf32> to vector<16x32xf32>
    %25 = arith.addf %21, %24 : vector<16x32xf32>
    %26 = arith.truncf %25 : vector<16x32xf32> to vector<16x32xbf16>
    %c0_23 = arith.constant 0 : index
    %c0_24 = arith.constant 0 : index
    %27 = vector.load %arg6[%c0_23, %c0_24] : memref<16x32xbf16, #tpu.memory_space<vmem>>, vector<16x32xbf16>
    tpu.vector_store %arg6[%c0_23, %c0_24], %26 {strides = array<i32>} : memref<16x32xbf16, #tpu.memory_space<vmem>>, vector<16x32xbf16>,
    return
  }
  func.func @transform_0(%arg0: i32) -> (i32, i32) {
    %c0_i32 = arith.constant 0 : i32
    %c0_i32_0 = arith.constant 0 : i32
    return %arg0, %c0_i32 : i32, i32
  }
  func.func @transform_1(%arg0: i32) -> (i32, i32, i32) {
    %c0_i32 = arith.constant 0 : i32
    %c0_i32_0 = arith.constant 0 : i32
    %c0_i32_1 = arith.constant 0 : i32
    %c0_i32_2 = arith.constant 0 : i32
    return %c0_i32, %c0_i32_0, %c0_i32_1 : i32, i32, i32
  }
  func.func @transform_2(%arg0: i32) -> (i32, i32, i32) {
    %c0_i32 = arith.constant 0 : i32
    %c0_i32_0 = arith.constant 0 : i32
    %c0_i32_1 = arith.constant 0 : i32
    %c0_i32_2 = arith.constant 0 : i32
    return %c0_i32, %c0_i32_0, %c0_i32_1 : i32, i32, i32
  }
  func.func @transform_3(%arg0: i32) -> (i32, i32) {
    %c0_i32 = arith.constant 0 : i32
    %c0_i32_0 = arith.constant 0 : i32
    return %arg0, %c0_i32 : i32, i32
  }
  func.func @transform_4(%arg0: i32) -> (i32, i32) {
    %c0_i32 = arith.constant 0 : i32
    %c0_i32_0 = arith.constant 0 : i32
    return %arg0, %c0_i32 : i32, i32
  }
  func.func @transform_5(%arg0: i32) -> (i32, i32) {
    %c0_i32 = arith.constant 0 : i32
    %c0_i32_0 = arith.constant 0 : i32
    return %arg0, %c0_i32 : i32, i32
  }
}

</mosaic_0001>

<bundles_post_ra>
// kernel: tpu_custom_call.1
= control target key start
LH: loop header
LB: loop body
LE: loop exit
PB: predicated region body
PF: predicated region fallthrough
CT: control target
= control target key end

     0   :  { %11 = vsyncpa [#allocation3], 0  ;;  %s717_s0 = inlined_call_operand.hbm [shape: bf16[16,32], index: 0, kind: input, shape index: {}]   ;;  %s718_s1 = inlined_call_operand.hbm [shape: bf16[3,32,32], index: 1, kind: input, shape index: {}]   ;;  %s719_s2 = inlined_call_operand.hbm [shape: f32[3,1,32], index: 2, kind: input, shape index: {}]   ;;  %s720_s3 = inlined_call_operand.hbm [shape: bf16[16,32], index: 3, kind: output, shape index: {0}]   ;;  %s721_s4 = inlined_call_operand.hbm [shape: bf16[16,32], index: 4, kind: output, shape index: {1}]   ;;  %s722_s5 = inlined_call_operand.hbm [shape: bf16[16,32], index: 5, kind: output, shape index: {2}]  }
   0x1   :  { %12 = vsyncpa [#allocation6], 0 }
   0x2   :  { %13 = vsyncpa [#allocation4], 0 }
   0x3   :  { %14 = vsyncpa [#allocation10], 0  ;;  %s565_s18 = smov [#allocation5]   ;;  %s566_s20 = smov [#allocation2]  }
   0x4   :  { %s32_s19 = sshll.u32 %s565_s18, 4  ;;  %s20_s21 = sshll.u32 %s566_s20, 4  ;;  %s33_s19 = int_to_ptr.vmem [resolvable:$true] %s32_s19  ;;  %s607_s21 = int_to_ptr.vmem [resolvable:$true] %s20_s21 }
   0x5   :  { %s425_s24 = scalar_lea.hbm %s718_s1, 768 }
   0x6   :  { %p426_p0 = scmp.ne.s32.totalorder %s718_s1, %s425_s24  ;;  %p429_p1 = scmp.lt.u32.totalorder %s425_s24, %s718_s1 }
   0x8   :  { %p431_p2 = pnand %p429_p1, %p426_p0 }
   0xa   :  { %434 = shalt.err (!%p431_p2)
}
   0xb   :  { %s435_s29 = scalar_lea.vmem %s33_s19, 768  ;;  %p440_p4 = scmp.lt.s32.totalorder %s33_s19, %s33_s19 }
   0xc   :  { %p436_p3 = scmp.ne.s32.totalorder %s33_s19, %s435_s29  ;;  %p441_p5 = scmp.lt.s32.totalorder %s435_s29, %s435_s29 }
   0xe   :  { %p442_p6 = por %p441_p5, %p440_p4 }
  0x10   :  { %p443_p7 = pnand %p442_p6, %p436_p3 }
  0x12   :  { %446 = shalt.err (!%p443_p7)
}
  0x13   :  { %s567_s30 = smov 64   ;;  %s568_s6 = smov 4  }
  0x14   :  { %38 = dma.hbm_to_vmem [thread:$0]  %s718_s1, 768, %s33_s19, [#allocation6], %s567_s30, %s567_s30, %s568_s6  }
  0x15   :  { %s447_s11 = scalar_lea.hbm %s717_s0, 128 }
  0x16   :  { %p448_p8 = scmp.ne.s32.totalorder %s717_s0, %s447_s11  ;;  %p451_p9 = scmp.lt.u32.totalorder %s447_s11, %s717_s0 }
  0x18   :  { %p453_p10 = pnand %p451_p9, %p448_p8 }
  0x1a   :  { %456 = shalt.err (!%p453_p10)
}
  0x1b   :  { %s457_s16 = scalar_lea.vmem %s607_s21, 128  ;;  %p462_p12 = scmp.lt.s32.totalorder %s607_s21, %s607_s21 }
  0x1c   :  { %p458_p11 = scmp.ne.s32.totalorder %s607_s21, %s457_s16  ;;  %p463_p13 = scmp.lt.s32.totalorder %s457_s16, %s457_s16 }
  0x1e   :  { %p464_p0 = por %p463_p13, %p462_p12 }
  0x20   :  { %p465_p1 = pnand %p464_p0, %p458_p11 }
  0x22   :  { %468 = shalt.err (!%p465_p1)
}
  0x23   :  { %26 = dma.hbm_to_vmem [thread:$0]  %s717_s0, 128, %s607_s21, [#allocation3], %s567_s30, %s567_s30, %s568_s6  }
  0x24   :  { %s569_s18 = smov [#allocation7]   ;;  %s469_s23 = scalar_lea.hbm %s719_s2, 48 }
  0x25   :  { %s44_s19 = sshll.u32 %s569_s18, 4  ;;  %p470_p2 = scmp.ne.s32.totalorder %s719_s2, %s469_s23  ;;  %s45_s19 = int_to_ptr.vmem [resolvable:$true] %s44_s19 }
  0x26   :  { %p473_p3 = scmp.lt.u32.totalorder %s469_s23, %s719_s2 }
  0x28   :  { %p475_p4 = pnand %p473_p3, %p470_p2 }
  0x2a   :  { %478 = shalt.err (!%p475_p4)
}
  0x2b   :  { %s479_s28 = scalar_lea.vmem %s45_s19, 48  ;;  %s483_s0 = scalar_lea.vmem %s45_s19, 64 }
  0x2c   :  { %p480_p5 = scmp.ne.s32.totalorder %s45_s19, %s479_s28  ;;  %p484_p6 = scmp.lt.s32.totalorder %s45_s19, %s45_s19 }
  0x2d   :  { %p485_p7 = scmp.lt.s32.totalorder %s483_s0, %s479_s28 }
  0x2f   :  { %p486_p8 = por %p485_p7, %p484_p6 }
  0x31   :  { %p487_p9 = pnand %p486_p8, %p480_p5 }
  0x33   :  { %490 = shalt.err (!%p487_p9)
}
  0x34   :  { %s570_s21 = smov 16   ;;  %s571_s29 = smov 1  }
  0x35   :  { %50 = dma.hbm_to_vmem [thread:$0]  %s719_s2, 48, %s45_s19, [#allocation6], %s570_s21, %s570_s21, %s571_s29  }
  0x36   :  { %557 = dma.done.wait [#allocation3], 128  }
  0x37   :  { %558 = vsyncadd [#allocation3], 4294967168 }
  0x38   :  { %559 = dma.done.wait [#allocation6], 816  }
  0x39   :  { %560 = vsyncadd [#allocation6], 4294966480  ;;  %v572_v0 = vmov 0.0   ;;  %vm573_vm0 = vmmov 0   ;;  %v418_v1 = vld [vmem:[#allocation5] sm:$0xff]   ;;  %v419_v2 = vld [vmem:[#allocation5 + $0x8] sm:$0xff]  }
  0x3a   :  { %382 = vmatprep.subr.bf16.mxu0 %v572_v0  ;;  %390 = vmatprep.subr.bf16.mxu1 %v572_v0  ;;  %v420_v3 = vld [vmem:[#allocation5 + $0x10] sm:$0xff]   ;;  %v421_v4 = vld [vmem:[#allocation2] sm:$0xff]   ;;  %vm91_vm1 = vcmask 261120   ;;  %v422_v6 = vld [vmem:[#allocation5 + $0x20] sm:$0xff]   ;;  %vm144_vm2 = vcmask 257024   ;;  %s574_s2 = smov [#allocation8]  }
  0x3b   :  { %386 = vmatprep.mubr.msk.bf16.mxu0 %vm573_vm0, %v572_v0  ;;  %394 = vmatprep.mubr.msk.bf16.mxu1 %vm573_vm0, %v572_v0  ;;  %v423_v5 = vld [vmem:[#allocation5 + $0x18] sm:$0xff]   ;;  %v424_v7 = vld [vmem:[#allocation5 + $0x28] sm:$0xff]   ;;  %v348_v8 = vld [vmem:[#allocation7] ss:$0 sm:$0xff]  ;;  %s304_s9 = sshll.u32 %s574_s2, 4  ;;  %s575_s10 = smov [#allocation9]   ;;  %s305_s9 = int_to_ptr.vmem [resolvable:$true] %s304_s9 }
  0x3c   :  { %383 = vmatpush3.bf16.msra.mxu0 %v418_v1  ;;  %391 = vmatpush3.bf16.msra.mxu1 %v420_v3  ;;  %v355_v10 = vld [vmem:[#allocation7 + $0x1] ss:$0 sm:$0xff]  ;;  %s316_s11 = sshll.u32 %s575_s10, 4  ;;  %v361_v25 = vld [vmem:[#allocation7 + $0x2] ss:$0 sm:$0xff]  ;;  %s491_s12 = scalar_lea.vmem %s305_s9, 128  ;;  %s662_s11 = int_to_ptr.vmem [resolvable:$true] %s316_s11 }
  0x3d   :  { %384 = vmatprep.subr.bf16.mxu0 %v572_v0  ;;  %392 = vmatprep.subr.bf16.mxu1 %v572_v0  ;;  %p492_p10 = scmp.ne.s32.totalorder %s305_s9, %s491_s12  ;;  %p496_p11 = scmp.lt.s32.totalorder %s305_s9, %s305_s9 }
  0x3e   :  { %p497_p12 = scmp.lt.s32.totalorder %s491_s12, %s491_s12 }
  0x40   :  { %385 = vmatpush3.bf16.msra.mxu0 %v419_v2  ;;  %393 = vmatpush3.bf16.msra.mxu1 %v423_v5  ;;  %p498_p13 = por %p497_p12, %p496_p11 }
  0x41   :  { %398 = vmatprep.subr.bf16.mxu0 %v572_v0 }
  0x42   :  { %p499_p0 = pnand %p498_p13, %p492_p10 }
  0x43   :  { %387 = vmatmul.mubr.msk.bf16.vlgmr.msra.gmra.mrb[0].mxu0 %vm91_vm1, %v421_v4  ;;  %395 = vmatmul.mubr.msk.bf16.vlgmr.msra.gmra.mrb[0].mxu1 %vm91_vm1, %v421_v4 }
  0x44   :  { %399 = vmatpush3.bf16.msra.mxu0 %v422_v6  ;;  %402 = vmatprep.mubr.msk.bf16.mxu0 %vm573_vm0, %v572_v0 }
  0x45   :  { %400 = vmatprep.subr.bf16.mxu0 %v572_v0 }
  0x48   :  { %401 = vmatpush3.bf16.msra.mxu0 %v424_v7 }
  0x4b   :  { %403 = vmatmul.mubr.msk.bf16.vlgmr.msra.gmra.mrb[4].mxu0 %vm91_vm1, %v421_v4 }
 0x116   :  { %v129_v9 = vpop.f32.mrb[0].mxu0  ;;  %v206_v14 = vpop.f32.mrb[0].mxu1 }
 0x117   :  { %v130_v11 = vadd.f32 %v348_v8, %v129_v9  ;;  %v388_v12 = vpop.f32.mrb[1].mxu0  ;;  %v207_v18 = vadd.f32 %v355_v10, %v206_v14  ;;  %v396_v19 = vpop.f32.mrb[1].mxu1 }
 0x118   :  { %v132_v13 = vpop.f32.mrb[2].mxu0  ;;  %v209_v20 = vpop.f32.mrb[2].mxu1 }
 0x119   :  { %v367_v15 = vpack.c.bf16 %v130_v11, %v130_v11  ;;  %v133_v16 = vadd.f32 %v348_v8, %v132_v13  ;;  %v389_v17 = vpop.f32.mrb[3].mxu0  ;;  %v369_v22 = vpack.c.bf16 %v207_v18, %v207_v18  ;;  %v210_v23 = vadd.f32 %v355_v10, %v209_v20  ;;  %v397_v24 = vpop.f32.mrb[3].mxu1 }
 0x11b   :  { %v368_v21 = vpack.c.bf16 %v133_v16, %v133_v16  ;;  %145 = vst.msk [vmem:[#allocation8] sm:$0xf] %vm144_vm2, %v367_v15  ;;  %v370_v26 = vpack.c.bf16 %v210_v23, %v210_v23  ;;  %221 = vst.msk [vmem:[#allocation9] sm:$0xf] %vm144_vm2, %v369_v22 }
 0x11d   :  { %146 = vst.msk [vmem:[#allocation8 + $0x4] sm:$0xf] %vm144_vm2, %v368_v21 }
 0x11e   :  { %v282_v27 = vpop.f32.mrb[4].mxu0 }
 0x11f   :  { %502 = shalt.err (!%p499_p0)
}
 0x120   :  { %s503_s15 = scalar_lea.hbm %s720_s3, 128 }
 0x121   :  { %p504_p1 = scmp.ne.s32.totalorder %s720_s3, %s503_s15  ;;  %p507_p2 = scmp.lt.u32.totalorder %s503_s15, %s720_s3 }
 0x123   :  { %p509_p3 = pnand %p507_p2, %p504_p1 }
 0x125   :  { %512 = shalt.err (!%p509_p3)
}
 0x126   :  { %310 = dma.vmem_to_hbm [thread:$0]  %s305_s9, 128, %s720_s3, [#allocation4], %s567_s30, %s567_s30, %s568_s6   ;;  %v283_v28 = vadd.f32 %v361_v25, %v282_v27  ;;  %222 = vst.msk [vmem:[#allocation9 + $0x4] sm:$0xf] %vm144_vm2, %v370_v26  ;;  %v404_v29 = vpop.f32.mrb[5].mxu0 }
 0x127   :  { %s576_s22 = smov [#allocation11]   ;;  %v285_v30 = vpop.f32.mrb[6].mxu0  ;;  %s513_s24 = scalar_lea.vmem %s662_s11, 128 }
 0x128   :  { %s328_s23 = sshll.u32 %s576_s22, 4  ;;  %p514_p4 = scmp.ne.s32.totalorder %s662_s11, %s513_s24  ;;  %s329_s23 = int_to_ptr.vmem [resolvable:$true] %s328_s23 }
 0x129   :  { %p518_p5 = scmp.lt.s32.totalorder %s662_s11, %s662_s11  ;;  %p519_p6 = scmp.lt.s32.totalorder %s513_s24, %s513_s24 }
 0x12b   :  { %p520_p7 = por %p519_p6, %p518_p5 }
 0x12d   :  { %p521_p8 = pnand %p520_p7, %p514_p4 }
 0x12f   :  { %524 = shalt.err (!%p521_p8)
}
 0x130   :  { %s525_s27 = scalar_lea.hbm %s721_s4, 128 }
 0x131   :  { %p526_p9 = scmp.ne.s32.totalorder %s721_s4, %s525_s27  ;;  %p529_p10 = scmp.lt.u32.totalorder %s525_s27, %s721_s4 }
 0x133   :  { %p531_p11 = pnand %p529_p10, %p526_p9 }
 0x135   :  { %534 = shalt.err (!%p531_p11)
}
 0x136   :  { %322 = dma.vmem_to_hbm [thread:$0]  %s662_s11, 128, %s721_s4, [#allocation10], %s567_s30, %s567_s30, %s568_s6   ;;  %v371_v31 = vpack.c.bf16 %v283_v28, %v283_v28  ;;  %v286_v32 = vadd.f32 %v361_v25, %v285_v30  ;;  %v405_v33 = vpop.f32.mrb[7].mxu0 }
 0x137   :  { %s535_s8 = scalar_lea.vmem %s329_s23, 128  ;;  %p540_p13 = scmp.lt.s32.totalorder %s329_s23, %s329_s23 }
 0x138   :  { %297 = vst.msk [vmem:[#allocation11] sm:$0xf] %vm144_vm2, %v371_v31  ;;  %v372_v34 = vpack.c.bf16 %v286_v32, %v286_v32  ;;  %p536_p12 = scmp.ne.s32.totalorder %s329_s23, %s535_s8  ;;  %p541_p0 = scmp.lt.s32.totalorder %s535_s8, %s535_s8 }
 0x13a   :  { %298 = vst.msk [vmem:[#allocation11 + $0x4] sm:$0xf] %vm144_vm2, %v372_v34  ;;  %p542_p1 = por %p541_p0, %p540_p13 }
 0x13c   :  { %p543_p2 = pnand %p542_p1, %p536_p12 }
 0x13e   :  { %546 = shalt.err (!%p543_p2)
}
 0x13f   :  { %s547_s4 = scalar_lea.hbm %s722_s5, 128 }
 0x140   :  { %p548_p3 = scmp.ne.s32.totalorder %s722_s5, %s547_s4  ;;  %p551_p4 = scmp.lt.u32.totalorder %s547_s4, %s722_s5 }
 0x142   :  { %p553_p5 = pnand %p551_p4, %p548_p3 }
 0x144   :  { %556 = shalt.err (!%p553_p5)
}
 0x145   :  { %334 = dma.vmem_to_hbm [thread:$0]  %s329_s23, 128, %s722_s5, [#allocation10], %s567_s30, %s567_s30, %s568_s6  }
 0x146   :  { %561 = dma.done.wait [#allocation4], 128  }
 0x147   :  { %562 = vsyncadd [#allocation4], 4294967168 }
 0x148   :  { %563 = dma.done.wait [#allocation10], 256  }
 0x149   :  { %564 = vsyncadd [#allocation10], 4294967040 }
 0x14a   :  { %344 = vsyncpa [#allocation3], 1 }
 0x14b   :  { %345 = vsyncpa [#allocation6], 1 }
 0x14c   :  { %346 = vsyncpa [#allocation4], 1 }
 0x14d   :  { %347 = vsyncpa [#allocation10], 1 }

</bundles_post_ra>
